<compile_context>
chip_gen: v6e
topology: v6e:2x2x1
jax: 0.10.0
libtpu: 0.0.40
codegen_flags: <defaults>
</compile_context>

<pallas_src>
import functools

import jax
import jax.numpy as jnp
from jax.experimental import pallas as pl
from jax.experimental.pallas import tpu as pltpu

IN_FEATURES = 2
HIDDEN = 5
OUT_FEATURES = 1

DEFAULT_TB = 8192       # batch elements (lanes) per grid step; multiple of 128
MIN_PALLAS_BATCH = 512  # below this, a fused XLA affine beats kernel launch cost


def fused_affine_kernel(params_ref, x_ref, o_ref):
    """Lane-packed fused affine: o[0, n] = w0*x[0, n] + w1*x[1, n] + b.

    params_ref: SMEM (3,)  -> [w0, w1, b]   (fused layer1 o layer2 parameters)
    x_ref:      VMEM (2, TB)  feature-major input tile (batch along lanes)
    o_ref:      VMEM (1, TB)  lane-packed output (one scalar per batch element)
    """
    w0 = params_ref[0]
    w1 = params_ref[1]
    b = params_ref[2]
    # Pure VPU work: two broadcasted multiplies + adds per vreg. No MXU.
    o_ref[...] = x_ref[0:1, :] * w0 + x_ref[1:2, :] * w1 + b


def prepare_params(w1, b1, w2, b2):
    """One-time parameter prep (hoisted out of the per-call path).

    Inputs use PyTorch nn.Linear layout: w1 (5,2), b1 (5,), w2 (1,5), b2 (1,).
    With no inter-layer nonlinearity the layers fold exactly:
        (x @ W1^T + b1) @ W2^T + b2 = x @ (W1^T W2^T) + (b1 @ W2^T + b2)
    Returns a (3,) f32 array [w0, w1, b] destined for SMEM.
    """
    w_fused = (w1.T @ w2.T)[:, 0]        # (2,)
    b_fused = b1 @ w2.T + b2             # (1,)
    return jnp.concatenate([w_fused, b_fused]).astype(jnp.float32)  # [w0, w1, b]


@functools.partial(jax.jit, static_argnames=("tb", "force_pallas"))
def circle_model_v0(x, params, *, tb=DEFAULT_TB, force_pallas=False):
    """x: (B, 2) -> (B, 1) float32. `params` is the (3,) array from prepare_params()."""
    B = x.shape[0]
    x = x.astype(jnp.float32)

    if B < MIN_PALLAS_BATCH and not force_pallas:
        # Tiny-batch fast path: let XLA fuse the 3-scalar affine directly.
        return x[:, 0:1] * params[0] + x[:, 1:2] * params[1] + params[2]

    assert tb % 128 == 0, "batch tile must be a multiple of 128 lanes"
    TB = int(min(tb, pl.cdiv(B, 128) * 128))       # lane-tile, multiple of 128
    B_pad = int(pl.cdiv(B, TB) * TB)

    # Feature-major input: batch along lanes. Only the lane tail is padded
    # (no feature padding, no 128-wide output slab).
    x_t = x.T                                      # (2, B)
    if B_pad != B:
        x_t = jnp.pad(x_t, ((0, 0), (0, B_pad - B)))

    out_p = pl.pallas_call(
        fused_affine_kernel,
        out_shape=jax.ShapeDtypeStruct((1, B_pad), jnp.float32),
        grid=(B_pad // TB,),
        in_specs=[
            # 3 fused scalars live in SMEM; frees vld slots for the x stream.
            pl.BlockSpec(memory_space=pltpu.MemorySpace.SMEM),
            # Feature-major x tile: first dim (2) equals the full array dim,
            # last dim is a multiple of 128 -> satisfies the (8,128) rule.
            pl.BlockSpec((2, TB), lambda i: (0, i)),
        ],
        # Lane-packed output tile: unmasked, lane-dense stores.
        out_specs=pl.BlockSpec((1, TB), lambda i: (0, i)),
        compiler_params=pltpu.CompilerParams(
            # "parallel" lets v7x shard grid steps across its 2 TensorCores
            # when grid >= 2; harmless no-op on v5e/v6e and for grid=(1,).
            dimension_semantics=("parallel",),
        ),
    )(params, x_t)

    # Valid results are the first B lanes; padded lanes (= bias value) are dropped.
    return out_p[0, :B].reshape(B, OUT_FEATURES)


def init_params(key):
    """Deterministic init mirroring nn.Linear's default U(-1/sqrt(fan_in), ...)."""
    k1, k2, k3, k4 = jax.random.split(key, 4)
    bound1 = 1.0 / jnp.sqrt(IN_FEATURES)
    bound2 = 1.0 / jnp.sqrt(HIDDEN)
    w1 = jax.random.uniform(k1, (HIDDEN, IN_FEATURES), jnp.float32, -bound1, bound1)
    b1 = jax.random.uniform(k2, (HIDDEN,), jnp.float32, -bound1, bound1)
    w2 = jax.random.uniform(k3, (OUT_FEATURES, HIDDEN), jnp.float32, -bound2, bound2)
    b2 = jax.random.uniform(k4, (OUT_FEATURES,), jnp.float32, -bound2, bound2)
    return w1, b1, w2, b2


if __name__ == "__main__":
    key = jax.random.PRNGKey(0)
    k_params, k_x, k_x2, k_x3 = jax.random.split(key, 4)

    w1, b1, w2, b2 = init_params(k_params)
    # One-time parameter prep (cached / reused across calls).
    params = prepare_params(w1, b1, w2, b2)

    def ref_fn(xx):  # plain-JAX reference: same math as the torch module
        return (xx @ w1.T + b1) @ w2.T + b2

    # Small batch matching the torch module's usage (B=2); force the Pallas path.
    x = jax.random.normal(k_x, (2, IN_FEATURES), jnp.float32)
    out = jax.block_until_ready(circle_model_v0(x, params, force_pallas=True))
    assert out.shape == (2, OUT_FEATURES)
    assert jnp.allclose(out, ref_fn(x), atol=1e-5), (out, ref_fn(x))

    # Same small batch through the tiny-batch XLA fast path (gate check).
    out_gate = jax.block_until_ready(circle_model_v0(x, params))
    assert jnp.allclose(out_gate, ref_fn(x), atol=1e-5)

    # Larger batch with a non-128-multiple B exercises the lane-tail padding.
    x_big = jax.random.normal(k_x2, (1000, IN_FEATURES), jnp.float32)
    out_big = jax.block_until_ready(circle_model_v0(x_big, params))
    assert out_big.shape == (1000, OUT_FEATURES)
    assert jnp.allclose(out_big, ref_fn(x_big), atol=1e-5)

    # Big batch -> grid of 3 steps, exercising the "parallel" batch axis.
    x_huge = jax.random.normal(k_x3, (20000, IN_FEATURES), jnp.float32)
    out_huge = jax.block_until_ready(circle_model_v0(x_huge, params))
    assert out_huge.shape == (20000, OUT_FEATURES)
    assert jnp.allclose(out_huge, ref_fn(x_huge), atol=1e-5)

    print("KERNEL_OK")
</pallas_src>

<mosaic_0001>
module attributes {stable_mosaic.version = 11 : i64} {
  func.func @fused_affine_kernel(%arg0: i32, %arg1: memref<3xf32, #tpu.memory_space<smem>>, %arg2: memref<2x128xf32, #tpu.memory_space<vmem>>, %arg3: memref<1x128xf32, #tpu.memory_space<vmem>>) attributes {dimension_semantics = [#tpu.dimension_semantics<parallel>], iteration_bounds = array<i64: 1>, scalar_prefetch = 0 : i64, scratch_operands = 0 : i64, tpu.core_type = #tpu.core_type<tc>, window_params = [{transform_indices = @transform_0, window_bounds = array<i64: 3>}, {transform_indices = @transform_1, window_bounds = array<i64: 2, 128>}, {transform_indices = @transform_2, window_bounds = array<i64: 1, 128>}]} {
    %c0 = arith.constant 0 : index
    %0 = memref.load %arg1[%c0] : memref<3xf32, #tpu.memory_space<smem>>
    %c1 = arith.constant 1 : index
    %1 = memref.load %arg1[%c1] : memref<3xf32, #tpu.memory_space<smem>>
    %c2 = arith.constant 2 : index
    %2 = memref.load %arg1[%c2] : memref<3xf32, #tpu.memory_space<smem>>
    %c0_0 = arith.constant 0 : index
    %c0_1 = arith.constant 0 : index
    %3 = vector.load %arg2[%c0_0, %c0_1] : memref<2x128xf32, #tpu.memory_space<vmem>>, vector<1x128xf32>
    %4 = vector.broadcast %0 : f32 to vector<1x128xf32>
    %5 = arith.mulf %3, %4 : vector<1x128xf32>
    %c1_2 = arith.constant 1 : index
    %c0_3 = arith.constant 0 : index
    %6 = vector.load %arg2[%c1_2, %c0_3] : memref<2x128xf32, #tpu.memory_space<vmem>>, vector<1x128xf32>
    %7 = vector.broadcast %1 : f32 to vector<1x128xf32>
    %8 = arith.mulf %6, %7 : vector<1x128xf32>
    %9 = arith.addf %5, %8 : vector<1x128xf32>
    %10 = vector.broadcast %2 : f32 to vector<1x128xf32>
    %11 = arith.addf %9, %10 : vector<1x128xf32>
    %c0_4 = arith.constant 0 : index
    %c0_5 = arith.constant 0 : index
    %12 = vector.load %arg3[%c0_4, %c0_5] : memref<1x128xf32, #tpu.memory_space<vmem>>, vector<1x128xf32>
    tpu.vector_store %arg3[%c0_4, %c0_5], %11 {strides = array<i32>} : memref<1x128xf32, #tpu.memory_space<vmem>>, vector<1x128xf32>,
    return
  }
  func.func @transform_0(%arg0: i32) -> i32 {
    %c0_i32 = arith.constant 0 : i32
    %c0_i32_0 = arith.constant 0 : i32
    return %c0_i32 : i32
  }
  func.func @transform_1(%arg0: i32) -> (i32, i32) {
    %c0_i32 = arith.constant 0 : i32
    %c0_i32_0 = arith.constant 0 : i32
    return %c0_i32, %arg0 : i32, i32
  }
  func.func @transform_2(%arg0: i32) -> (i32, i32) {
    %c0_i32 = arith.constant 0 : i32
    %c0_i32_0 = arith.constant 0 : i32
    return %c0_i32, %arg0 : i32, i32
  }
}

</mosaic_0001>

<bundles_post_ra>
// kernel: circle_model_v0.1
= control target key start
LH: loop header
LB: loop body
LE: loop exit
PB: predicated region body
PF: predicated region fallthrough
CT: control target
= control target key end

     0   :  { %7 = vsyncpa [#allocation3], 0  ;;  %s87_s0 = inlined_call_operand.vmem [shape: f32[3], index: 0, kind: input, shape index: {}]   ;;  %s88_s1 = inlined_call_operand.vmem [shape: f32[2,128], index: 1, kind: input, shape index: {}]   ;;  %s89_s2 = inlined_call_operand.vmem [shape: f32[1,128], index: 2, kind: output, shape index: {}]  }
   0x1   :  { %s14_s11 = sshll.u32 %s87_s0, 4  ;;  %s15_s11 = int_to_ptr.vmem [resolvable:$true] %s14_s11 }
   0x2   :  { %s45_s12 = scalar_lea.vmem %s15_s11, 16  ;;  %p50_p1 = scmp.lt.s32.totalorder %s15_s11, %s15_s11 }
   0x3   :  { %p46_p0 = scmp.ne.s32.totalorder %s15_s11, %s45_s12  ;;  %p51_p2 = scmp.lt.s32.totalorder %s45_s12, %s45_s12 }
   0x5   :  { %p52_p3 = por %p51_p2, %p50_p1 }
   0x7   :  { %p53_p4 = pnand %p52_p3, %p46_p0 }
   0x9   :  { %56 = shalt.err (!%p53_p4)
}
   0xa   :  { %s59_s13 = smov [#allocation2]  }
   0xb   :  { %17 = dma.vmem_to_smem %s15_s11, 16, %s59_s13, [#allocation3]  }
   0xc   :  { %57 = dma.done.wait [#allocation3], 16  }
   0xd   :  { %58 = vsyncadd [#allocation3], 4294967280 }
   0xe   :  { %23 = sfence }
   0xf   :  { %s24_s14 = sld [smem:[#allocation2]]  ;;  %v27_v0 = vld [vmem:[%s88_s1] sm:$0x1]  ;;  %v30_v1 = vld [vmem:[%s88_s1 + $0x1] sm:$0x1] }
  0x10   :  { %s42_s15 = sld [smem:[#allocation2 + $0x1]] }
  0x11   :  { %s43_s16 = sld [smem:[#allocation2 + $0x2]] }
  0x15   :  { %v28_v2 = vstv %s24_s14 }
  0x16   :  { %v29_v3 = vmul.f32 %v28_v2, %v27_v0  ;;  %v31_v4 = vstv %s42_s15 }
  0x17   :  { %v32_v5 = vmul.f32 %v31_v4, %v30_v1  ;;  %v34_v6 = vstv %s43_s16 }
  0x19   :  { %v33_v7 = vadd.f32 %v32_v5, %v29_v3 }
  0x1b   :  { %v35_v8 = vadd.f32 %v34_v6, %v33_v7 }
  0x1d   :  { %36 = vst [vmem:[%s89_s2] sm:$0x1] %v35_v8 }
  0x1e   :  { %41 = vsyncpa [#allocation3], 1 }

</bundles_post_ra>
